<compile_context>
chip_gen: v7x
topology: tpu7x:2x2x1
jax: 0.10.0
libtpu: 0.0.40
codegen_flags: <defaults>
</compile_context>

<pallas_src>
import jax
import jax.numpy as jnp
from jax import lax
from jax.experimental import pallas as pl
from jax.experimental.pallas import tpu as pltpu

EPS = 1e-5


def _bn_after_linear_kernel(x_ref, w_ref, gb_ref, o_ref):
    # x_ref:  (N, F_in)      float32
    # w_ref:  (F_out, F_in)  float32   PyTorch Linear weight, NOT pre-transposed
    # gb_ref: (2, F_out)     float32   row 0 = gamma (BN weight), row 1 = beta (BN bias)
    # o_ref:  (N, F_out)     float32
    x = x_ref[...]
    w = w_ref[...]

    # Linear (no bias): z[n, o] = sum_k x[n, k] * w[o, k].
    # Transposed contraction done natively on the MXU (no wrapper transpose).
    z = lax.dot_general(
        x, w,
        dimension_numbers=(((1,), (1,)), ((), ())),
        preferred_element_type=jnp.float32,
    )                                                   # (N, F_out)

    n = z.shape[0]
    inv_n = 1.0 / n

    # Training-mode BatchNorm1d statistics over the batch (sublane) axis.
    # Two-pass form (mean first, then centered second moment) for robustness.
    mean = jnp.sum(z, axis=0, keepdims=True) * inv_n            # (1, F_out)
    diff = z - mean
    var = jnp.sum(diff * diff, axis=0, keepdims=True) * inv_n   # biased variance

    gb = gb_ref[...]                                    # (2, F_out)
    gamma = gb[0:1, :]
    beta = gb[1:2, :]

    # Fold BN affine into one per-feature scale/shift (single padded vreg row);
    # rsqrt goes to the EUP slot (effectively free).
    scale = gamma * lax.rsqrt(var + EPS)                # (1, F_out)
    shift = beta - mean * scale                         # (1, F_out)

    # Single full-tile FMA epilogue.
    o_ref[...] = (z * scale + shift).astype(o_ref.dtype)


def pack_bn_params(gamma, beta):
    """Pack BN affine params once, OUTSIDE the per-step hot path."""
    return jnp.stack([gamma, beta], axis=0)             # (2, F_out)


def bn_after_linear(x, weight, gb):
    """x: (N, 10) f32; weight: (20, 10) f32 (PyTorch layout); gb: (2, 20) f32 -> (N, 20)."""
    n, f_in = x.shape
    f_out = weight.shape[0]

    cost = pl.CostEstimate(
        flops=2 * n * f_in * f_out + 6 * n * f_out,
        transcendentals=f_out,
        bytes_accessed=4 * (n * f_in + f_out * f_in + 2 * f_out + n * f_out),
    )

    # Tiny shapes: each operand is a single full-array block resident in VMEM
    # (full-array blocks satisfy the (8,128) tiling rule).  No grid -> no
    # dimension_semantics needed; batching/gridding only pays off at scale.
    vmem = pl.BlockSpec(memory_space=pltpu.MemorySpace.VMEM)
    return pl.pallas_call(
        _bn_after_linear_kernel,
        out_shape=jax.ShapeDtypeStruct((n, f_out), jnp.float32),
        in_specs=[vmem, vmem, vmem],
        out_specs=vmem,
        cost_estimate=cost,
    )(x, weight, gb)


def reference(x, weight, gamma, beta):
    z = x @ weight.T
    mean = jnp.mean(z, axis=0, keepdims=True)
    var = jnp.mean((z - mean) ** 2, axis=0, keepdims=True)
    return (z - mean) / jnp.sqrt(var + EPS) * gamma + beta


if __name__ == "__main__":
    key = jax.random.PRNGKey(0)
    k_x, k_w, k_g, k_b = jax.random.split(key, 4)

    N, F_IN, F_OUT = 8, 10, 20

    x = jax.random.normal(k_x, (N, F_IN), dtype=jnp.float32)
    # Deterministic synthetic parameters (Linear(10, 20, bias=False), BatchNorm1d(20)).
    weight = jax.random.normal(k_w, (F_OUT, F_IN), dtype=jnp.float32) * 0.1
    gamma = 1.0 + 0.1 * jax.random.normal(k_g, (F_OUT,), dtype=jnp.float32)
    beta = 0.1 * jax.random.normal(k_b, (F_OUT,), dtype=jnp.float32)

    # Parameters are static: pack once, not per call.
    gb = pack_bn_params(gamma, beta)
    gb = jax.block_until_ready(gb)

    out = bn_after_linear(x, weight, gb)
    jax.block_until_ready(out)

    ref = reference(x, weight, gamma, beta)
    assert out.shape == (N, F_OUT)
    assert jnp.allclose(out, ref, atol=1e-4, rtol=1e-4), "mismatch vs reference"

    print("KERNEL_OK")
</pallas_src>

<mosaic_0001>
module attributes {stable_mosaic.version = 11 : i64} {
  func.func @_bn_after_linear_kernel(%arg0: memref<8x10xf32, #tpu.memory_space<vmem>>, %arg1: memref<20x10xf32, #tpu.memory_space<vmem>>, %arg2: memref<2x20xf32, #tpu.memory_space<vmem>>, %arg3: memref<8x20xf32, #tpu.memory_space<vmem>>) attributes {dimension_semantics = [], scalar_prefetch = 0 : i64, scratch_operands = 0 : i64, tpu.core_type = #tpu.core_type<tc>} {
    %c0 = arith.constant 0 : index
    %c0_0 = arith.constant 0 : index
    %0 = vector.load %arg0[%c0, %c0_0] : memref<8x10xf32, #tpu.memory_space<vmem>>, vector<8x10xf32>
    %c0_1 = arith.constant 0 : index
    %c0_2 = arith.constant 0 : index
    %1 = vector.load %arg1[%c0_1, %c0_2] : memref<20x10xf32, #tpu.memory_space<vmem>>, vector<20x10xf32>
    %cst = arith.constant dense<0.000000e+00> : vector<8x20xf32>
    %2 = tpu.matmul %0, %1, %cst {dimension_numbers = #tpu.dot_dimension_numbers<[1], [1], [0], [0], [0, 0, 1, 0], [], []>} : vector<8x10xf32>, vector<20x10xf32>, vector<8x20xf32> -> vector<8x20xf32>
    %cst_3 = arith.constant dense<0.000000e+00> : vector<20xf32>
    %3 = vector.multi_reduction <add>, %2, %cst_3 [0] : vector<8x20xf32> to vector<20xf32>
    %4 = vector.shape_cast %3 : vector<20xf32> to vector<1x20xf32>
    %cst_4 = arith.constant 1.250000e-01 : f32
    %5 = vector.broadcast %cst_4 : f32 to vector<1x20xf32>
    %6 = arith.mulf %4, %5 : vector<1x20xf32>
    %7 = vector.broadcast %6 : vector<1x20xf32> to vector<8x20xf32>
    %8 = arith.subf %2, %7 : vector<8x20xf32>
    %9 = arith.mulf %8, %8 : vector<8x20xf32>
    %cst_5 = arith.constant dense<0.000000e+00> : vector<20xf32>
    %10 = vector.multi_reduction <add>, %9, %cst_5 [0] : vector<8x20xf32> to vector<20xf32>
    %11 = vector.shape_cast %10 : vector<20xf32> to vector<1x20xf32>
    %cst_6 = arith.constant 1.250000e-01 : f32
    %12 = vector.broadcast %cst_6 : f32 to vector<1x20xf32>
    %13 = arith.mulf %11, %12 : vector<1x20xf32>
    %c0_7 = arith.constant 0 : index
    %c0_8 = arith.constant 0 : index
    %14 = vector.load %arg2[%c0_7, %c0_8] : memref<2x20xf32, #tpu.memory_space<vmem>>, vector<2x20xf32>
    %15 = vector.extract_strided_slice %14 {offsets = [0, 0], sizes = [1, 20], strides = [1, 1]} : vector<2x20xf32> to vector<1x20xf32>
    %16 = vector.extract_strided_slice %14 {offsets = [1, 0], sizes = [1, 20], strides = [1, 1]} : vector<2x20xf32> to vector<1x20xf32>
    %cst_9 = arith.constant 9.99999974E-6 : f32
    %17 = vector.broadcast %cst_9 : f32 to vector<1x20xf32>
    %18 = arith.addf %13, %17 : vector<1x20xf32>
    %19 = math.rsqrt %18 : vector<1x20xf32>
    %20 = arith.mulf %15, %19 : vector<1x20xf32>
    %21 = arith.mulf %6, %20 : vector<1x20xf32>
    %22 = arith.subf %16, %21 : vector<1x20xf32>
    %23 = vector.broadcast %20 : vector<1x20xf32> to vector<8x20xf32>
    %24 = arith.mulf %2, %23 : vector<8x20xf32>
    %25 = vector.broadcast %22 : vector<1x20xf32> to vector<8x20xf32>
    %26 = arith.addf %24, %25 : vector<8x20xf32>
    %c0_10 = arith.constant 0 : index
    %c0_11 = arith.constant 0 : index
    %27 = vector.load %arg3[%c0_10, %c0_11] : memref<8x20xf32, #tpu.memory_space<vmem>>, vector<8x20xf32>
    tpu.vector_store %arg3[%c0_10, %c0_11], %26 {strides = array<i32>} : memref<8x20xf32, #tpu.memory_space<vmem>>, vector<8x20xf32>,
    return
  }
}

</mosaic_0001>

<bundles_post_ra>
// kernel: tpu_custom_call.1
= control target key start
LH: loop header
LB: loop body
LE: loop exit
PB: predicated region body
PF: predicated region fallthrough
CT: control target
= control target key end

     0   :  { %vm19_vm0 = vcmask 80896   ;;  %v206_v2 = vmov 0.0|0.0   ;;  %vm207_vm2 = vmmov 0   ;;  %v208_v4 = vmov 0.0   ;;  %s260_s0 = inlined_call_operand.vmem [shape: f32[8,10], index: 0, kind: input, shape index: {}]   ;;  %s261_s1 = inlined_call_operand.vmem [shape: f32[20,10], index: 1, kind: input, shape index: {}]   ;;  %s262_s2 = inlined_call_operand.vmem [shape: f32[2,20], index: 2, kind: input, shape index: {}]   ;;  %s263_s3 = inlined_call_operand.hbm [shape: f32[8,20], index: 3, kind: output, shape index: {}]  }
   0x1   :  { %v16_v0 = vld [vmem:[%s261_s1] sm:$0xff]  ;;  %v17_v1 = vld [vmem:[%s261_s1 + $0x8] sm:$0xff]  ;;  %172 = vmatprep.subr.bf16.mxu0 %v206_v2  ;;  %vm174_vm1 = vmpackc.low %vm19_vm0, %vm19_vm0  ;;  %169 = vmatprep.mubr.msk.f32.mxu0 %vm207_vm2, %v208_v4 }
   0x2   :  { %v173_v3 = vpack.c.bf16 %v17_v1, %v16_v0 }
   0x3   :  { %8 = vsyncpa [#allocation3], 0  ;;  %v18_v5 = vld [vmem:[%s261_s1 + $0x10] sm:$0xf]  ;;  %v15_v6 = vld [vmem:[%s260_s0] sm:$0xff]  ;;  %vm102_vm3 = vcmask 162816   ;;  %v130_v28 = vlaneseq }
   0x4   :  { %175 = vmatpush3.bf16.xpose.msk.msra.mxu0 %vm174_vm1, %v173_v3  ;;  %v121_v30 = vld [vmem:[%s262_s2] sm:$0x3]  ;;  %s209_s20 = smov [#allocation2]  }
   0x5   :  { %167 = vmatprep.subr.mxu0 %v208_v4  ;;  %v131_v29 = vshrl.u32 %v130_v28, 7  ;;  %s147_s21 = sshll.u32 %s209_s20, 4  ;;  %s148_s21 = int_to_ptr.vmem [resolvable:$true] %s147_s21 }
   0x6   :  { %s182_s22 = scalar_lea.vmem %s148_s21, 128  ;;  %p187_p1 = scmp.lt.s32.totalorder %s148_s21, %s148_s21 }
   0x7   :  { %v132_v33 = vsub.s32 0, %v131_v29  ;;  %v137_v37 = vsub.s32 1, %v131_v29  ;;  %p183_p0 = scmp.ne.s32.totalorder %s148_s21, %s182_s22  ;;  %p188_p2 = scmp.lt.s32.totalorder %s182_s22, %s182_s22 }
   0x9   :  { %p189_p3 = por %p188_p2, %p187_p1 }
   0xb   :  { %p190_p4 = pnand %p189_p3, %p183_p0 }
   0xc   :  { %168 = vmatpush3.xpose.msk.msra.mxu0 %vm19_vm0, %v18_v5 }
   0xf   :  { %170 = vmatmul.mubr.msk.f32.vlgmr.msra.gmra.mrb[0].mxu0 %vm19_vm0, %v15_v6 }
  0xe2   :  { %v98_v7 = vpop.f32.mrb[0].mxu0 }
  0xe3   :  { %v103_v8 = vsel %vm102_vm3, %v98_v7, 0.0  ;;  %v171_v9 = vpop.f32.mrb[1].mxu0 }
  0xe4   :  { %v104_v10 = vrot.slane %v103_v8, 4 }
  0xe6   :  { %v105_v11 = vadd.f32 %v104_v10, %v103_v8 }
  0xe8   :  { %v106_v12 = vrot.slane %v105_v11, 2 }
  0xea   :  { %v107_v13 = vadd.f32 %v106_v12, %v105_v11 }
  0xec   :  { %v108_v14 = vrot.slane %v107_v13, 1 }
  0xee   :  { %v109_v15 = vadd.f32 %v108_v14, %v107_v13 }
  0xf0   :  { %v110_v16 = vmul.f32 0.125, %v109_v15 }
  0xf2   :  { %v111_v17 = vsub.f32 %v98_v7, %v110_v16 }
  0xf4   :  { %v112_v18 = vmul.f32 %v111_v17, %v111_v17 }
  0xf6   :  { %v113_v19 = vsel %vm102_vm3, %v112_v18, 0.0 }
  0xf7   :  { %v114_v20 = vrot.slane %v113_v19, 4 }
  0xf9   :  { %v115_v21 = vadd.f32 %v114_v20, %v113_v19 }
  0xfb   :  { %v116_v22 = vrot.slane %v115_v21, 2 }
  0xfd   :  { %v117_v23 = vadd.f32 %v116_v22, %v115_v21 }
  0xff   :  { %v118_v24 = vrot.slane %v117_v23, 1 }
 0x101   :  { %v119_v25 = vadd.f32 %v118_v24, %v117_v23 }
 0x103   :  { %v120_v26 = vmul.f32 0.125, %v119_v25 }
 0x105   :  { %v122_v27 = vadd.f32 1e-05, %v120_v26 }
 0x107   :  { %180 = vrsqrt.f32 %v122_v27 }
 0x111   :  { %v181_v31 = vpop.eup %180 }
 0x112   :  { %v124_v32 = vmul.f32 %v181_v31, %v121_v30 }
 0x114   :  { %v125_v34 = vmul.f32 %v124_v32, %v110_v16  ;;  %v133_v36 = vrot.slane %v124_v32, %v132_v33 }
 0x116   :  { %v127_v35 = vrot.slane %v125_v34, 7  ;;  %v134_v39 = vmul.f32 %v133_v36, %v98_v7 }
 0x118   :  { %v129_v38 = vsub.f32 %v121_v30, %v127_v35 }
 0x11a   :  { %v138_v40 = vrot.slane %v129_v38, %v137_v37 }
 0x11c   :  { %v139_v41 = vadd.f32 %v138_v40, %v134_v39 }
 0x11e   :  { %140 = vst.msk [vmem:[#allocation2] sm:$0xff] %vm102_vm3, %v139_v41 }
 0x11f   :  { %193 = shalt.err (!%p190_p4)
}
 0x120   :  { %s194_s24 = scalar_lea.hbm %s263_s3, 128 }
 0x121   :  { %p195_p5 = scmp.ne.s32.totalorder %s263_s3, %s194_s24  ;;  %p198_p6 = scmp.lt.u32.totalorder %s194_s24, %s263_s3 }
 0x123   :  { %p200_p7 = pnand %p198_p6, %p195_p5 }
 0x125   :  { %203 = shalt.err (!%p200_p7)
}
 0x126   :  { %150 = dma.vmem_to_hbm [thread:$0]  %s148_s21, 128, %s263_s3, [#allocation3]  }
 0x127   :  { %204 = dma.done.wait [#allocation3], 128  }
 0x128   :  { %205 = vsyncadd [#allocation3], 4294967168 }
 0x129   :  { %154 = vsyncpa [#allocation3], 1 }

</bundles_post_ra>
